<compile_context>
chip_gen: v6e
topology: v6e:2x2x1
jax: 0.10.0
libtpu: 0.0.40
codegen_flags: <defaults>
</compile_context>

<pallas_src>
import math

import jax
import jax.numpy as jnp
from jax.experimental import pallas as pl
from jax.experimental.pallas import tpu as pltpu


# ----------------------------------------------------------------------------- #
# Fused DeepAnT forward kernel
# ----------------------------------------------------------------------------- #
def _pool_adjacent_rows(a):
    """MaxPool1d(kernel=2, stride=2) as a max over adjacent sublane row pairs."""
    n = a.shape[0] // 2
    return jnp.concatenate(
        [jnp.maximum(a[2 * k:2 * k + 1, :], a[2 * k + 1:2 * k + 2, :])
         for k in range(n)],
        axis=0)


def _deepant_kernel(x_ref, w1_ref, b1_ref, w2_ref, b2_ref,
                    w3_ref, b3_ref, w4_ref, b4_ref, o_ref):
    """Full DeepAnT forward for one batch block in a single invocation.

    x_ref : (Bblk, L, D)   input block (original PyTorch layout)
    w1_ref: (L, 16)        conv1 weight (kernel_size=1), pre-transposed
    b1_ref: (1, 16)
    w2_ref: (16, 16)       conv2 weight (kernel_size=1), pre-transposed
    b2_ref: (1, 16)
    w3_ref: (16, 40)       dense1 weight, pre-transposed
    b3_ref: (1, 40)
    w4_ref: (40, DIM)      dense2 weight, pre-transposed
    b4_ref: (1, DIM)
    o_ref : (Bblk, DIM)    output block
    """
    bblk, _, d_len = x_ref.shape          # static
    x = x_ref[...]                        # (Bblk, L, D) f32

    # --- Relayout to the fused slab: row b*D + d  holds  x[b, :, d] ---------- #
    # Two tiny 2-D minor-dim transposes (XLU) + one sublane concat.
    slab = jnp.concatenate([x[b].T for b in range(bblk)], axis=0)   # (Bblk*D, L)

    # --- Conv1d #1 (kernel_size=1) + ReLU: ONE MXU matmul for all (b, d) ----- #
    a1 = jnp.maximum(
        jnp.dot(slab, w1_ref[...], preferred_element_type=jnp.float32)
        + b1_ref[...], 0.0)                                         # (Bblk*D, 16)

    # --- MaxPool1d(2): adjacent spatial positions are adjacent rows ---------- #
    p1 = _pool_adjacent_rows(a1)                                    # (Bblk*D/2, 16)

    # --- Conv1d #2 (kernel_size=1) + ReLU: ONE MXU matmul -------------------- #
    a2 = jnp.maximum(
        jnp.dot(p1, w2_ref[...], preferred_element_type=jnp.float32)
        + b2_ref[...], 0.0)                                         # (Bblk*D/2, 16)

    # --- MaxPool1d(2) again --------------------------------------------------- #
    p2 = _pool_adjacent_rows(a2)                                    # (Bblk, 16)

    # --- Flatten: post-pool spatial length is 1, so flatten == (Bblk, 16) ---- #
    # --- Linear(16, 40) + ReLU ------------------------------------------------ #
    h = jnp.maximum(
        jnp.dot(p2, w3_ref[...], preferred_element_type=jnp.float32)
        + b3_ref[...], 0.0)                                         # (Bblk, 40)

    # Dropout(p=0.25): identity at inference time.
    # TODO(synk): training-mode dropout (RNG mask) is not implemented.

    # --- Linear(40, DIM) ------------------------------------------------------ #
    o_ref[...] = (jnp.dot(h, w4_ref[...], preferred_element_type=jnp.float32)
                  + b4_ref[...])


# ----------------------------------------------------------------------------- #
# One-time parameter layout prep (hoisted out of the per-call forward path)
# ----------------------------------------------------------------------------- #
def prepare_params(params):
    """Transpose / reshape PyTorch-layout params ONCE for the Pallas kernel."""
    w1, b1, w2, b2, w3, b3, w4, b4 = params
    return (
        jnp.transpose(w1[:, :, 0]),   # (L, 16)
        b1.reshape(1, -1),            # (1, 16)
        jnp.transpose(w2[:, :, 0]),   # (16, 16)
        b2.reshape(1, -1),            # (1, 16)
        jnp.transpose(w3),            # (16, 40)
        b3.reshape(1, -1),            # (1, 40)
        jnp.transpose(w4),            # (40, DIM)
        b4.reshape(1, -1),            # (1, DIM)
    )


# ----------------------------------------------------------------------------- #
# Forward wrapper
# ----------------------------------------------------------------------------- #
def deepant_forward_pallas(prepared, x):
    """x: (B, L, D) float32 -> (B, D) float32, matching DeepAnT.forward (eval)."""
    w1t, b1r, w2t, b2r, w3t, b3r, w4t, b4r = prepared
    B, L, D = x.shape
    assert D == 4, "This kernel assumes DIMENSION == 4 (so Linear(16,40) fits)."
    dim_out = w4t.shape[1]

    # Batch-block grid: single step for tiny batches; shards across TensorCores
    # (v7x) for large window batches.
    bblk = 8 if (B > 8 and B % 8 == 0) else B
    grid = (B // bblk,)
    full2d = lambda i: (0, 0)

    return pl.pallas_call(
        _deepant_kernel,
        out_shape=jax.ShapeDtypeStruct((B, dim_out), jnp.float32),
        grid=grid,
        in_specs=[
            pl.BlockSpec((bblk, L, D), lambda i: (i, 0, 0)),
            pl.BlockSpec((L, 16), full2d),
            pl.BlockSpec((1, 16), full2d),
            pl.BlockSpec((16, 16), full2d),
            pl.BlockSpec((1, 16), full2d),
            pl.BlockSpec((16, 40), full2d),
            pl.BlockSpec((1, 40), full2d),
            pl.BlockSpec((40, dim_out), full2d),
            pl.BlockSpec((1, dim_out), full2d),
        ],
        out_specs=pl.BlockSpec((bblk, dim_out), lambda i: (i, 0)),
        compiler_params=pltpu.CompilerParams(
            dimension_semantics=("parallel",)),
    )(x, w1t, b1r, w2t, b2r, w3t, b3r, w4t, b4r)


deepant_forward = jax.jit(deepant_forward_pallas)


# ----------------------------------------------------------------------------- #
# Pure-JAX reference (same math as the PyTorch module, eval mode)
# ----------------------------------------------------------------------------- #
def deepant_reference(params, x):
    w1, b1, w2, b2, w3, b3, w4, b4 = params
    # conv1d kernel_size=1: (B, L, D) -> (B, 16, D)
    y = jnp.einsum('bld,ol->bod', x, w1[:, :, 0]) + b1[None, :, None]
    y = jnp.maximum(y, 0.0)
    dp = (y.shape[-1] // 2) * 2
    y = y[..., :dp].reshape(y.shape[0], y.shape[1], dp // 2, 2).max(-1)
    y = jnp.einsum('bcd,oc->bod', y, w2[:, :, 0]) + b2[None, :, None]
    y = jnp.maximum(y, 0.0)
    dp = (y.shape[-1] // 2) * 2
    y = y[..., :dp].reshape(y.shape[0], y.shape[1], dp // 2, 2).max(-1)
    y = y.reshape(y.shape[0], -1)               # flatten -> (B, 16)
    y = jnp.maximum(y @ w3.T + b3, 0.0)
    # dropout: identity (eval)
    return y @ w4.T + b4


# ----------------------------------------------------------------------------- #
# Parameter init (deterministic, PyTorch-style U(-1/sqrt(fan_in), 1/sqrt(fan_in)))
# ----------------------------------------------------------------------------- #
def init_deepant_params(key, lookback, dimension):
    ks = jax.random.split(key, 8)

    def u(k, shape, fan_in):
        bound = 1.0 / math.sqrt(float(fan_in))
        return jax.random.uniform(k, shape, jnp.float32, -bound, bound)

    w1 = u(ks[0], (16, lookback, 1), lookback)   # Conv1d(lookback, 16, k=1)
    b1 = u(ks[1], (16,), lookback)
    w2 = u(ks[2], (16, 16, 1), 16)               # Conv1d(16, 16, k=1)
    b2 = u(ks[3], (16,), 16)
    w3 = u(ks[4], (40, 16), 16)                  # Linear(16, 40)
    b3 = u(ks[5], (40,), 16)
    w4 = u(ks[6], (dimension, 40), 40)           # Linear(40, DIMENSION)
    b4 = u(ks[7], (dimension,), 40)
    return (w1, b1, w2, b2, w3, b3, w4, b4)


if __name__ == "__main__":
    LOOKBACK_SIZE = 8   # in_channels of conv1 (lookback window)
    DIMENSION = 4       # spatial length / output dim; must satisfy (D//2)//2 == 1
    BATCH = 2

    key = jax.random.PRNGKey(0)
    k_params, k_x = jax.random.split(key)
    params = init_deepant_params(k_params, LOOKBACK_SIZE, DIMENSION)
    prepared = prepare_params(params)   # one-time layout prep (not per forward)
    x = jax.random.normal(k_x, (BATCH, LOOKBACK_SIZE, DIMENSION), jnp.float32)

    out = jax.block_until_ready(deepant_forward(prepared, x))
    ref = jax.block_until_ready(deepant_reference(params, x))

    assert out.shape == (BATCH, DIMENSION), out.shape
    assert jnp.all(jnp.isfinite(out))
    assert jnp.allclose(out, ref, atol=1e-5, rtol=1e-5), float(
        jnp.max(jnp.abs(out - ref)))
    print("KERNEL_OK")
</pallas_src>

<mosaic_0001>
module attributes {stable_mosaic.version = 11 : i64} {
  func.func @_deepant_kernel(%arg0: i32, %arg1: memref<2x8x4xf32, #tpu.memory_space<vmem>>, %arg2: memref<8x16xf32, #tpu.memory_space<vmem>>, %arg3: memref<1x16xf32, #tpu.memory_space<vmem>>, %arg4: memref<16x16xf32, #tpu.memory_space<vmem>>, %arg5: memref<1x16xf32, #tpu.memory_space<vmem>>, %arg6: memref<16x40xf32, #tpu.memory_space<vmem>>, %arg7: memref<1x40xf32, #tpu.memory_space<vmem>>, %arg8: memref<40x4xf32, #tpu.memory_space<vmem>>, %arg9: memref<1x4xf32, #tpu.memory_space<vmem>>, %arg10: memref<2x4xf32, #tpu.memory_space<vmem>>) attributes {dimension_semantics = [#tpu.dimension_semantics<parallel>], iteration_bounds = array<i64: 1>, scalar_prefetch = 0 : i64, scratch_operands = 0 : i64, tpu.core_type = #tpu.core_type<tc>, window_params = [{transform_indices = @transform_0, window_bounds = array<i64: 2, 8, 4>}, {pipeline_mode = #tpu.pipeline_mode<synchronous>, transform_indices = @transform_1, window_bounds = array<i64: 8, 16>}, {pipeline_mode = #tpu.pipeline_mode<synchronous>, transform_indices = @transform_2, window_bounds = array<i64: 1, 16>}, {pipeline_mode = #tpu.pipeline_mode<synchronous>, transform_indices = @transform_3, window_bounds = array<i64: 16, 16>}, {pipeline_mode = #tpu.pipeline_mode<synchronous>, transform_indices = @transform_4, window_bounds = array<i64: 1, 16>}, {pipeline_mode = #tpu.pipeline_mode<synchronous>, transform_indices = @transform_5, window_bounds = array<i64: 16, 40>}, {pipeline_mode = #tpu.pipeline_mode<synchronous>, transform_indices = @transform_6, window_bounds = array<i64: 1, 40>}, {pipeline_mode = #tpu.pipeline_mode<synchronous>, transform_indices = @transform_7, window_bounds = array<i64: 40, 4>}, {pipeline_mode = #tpu.pipeline_mode<synchronous>, transform_indices = @transform_8, window_bounds = array<i64: 1, 4>}, {transform_indices = @transform_9, window_bounds = array<i64: 2, 4>}]} {
    %c0 = arith.constant 0 : index
    %c0_0 = arith.constant 0 : index
    %c0_1 = arith.constant 0 : index
    %0 = vector.load %arg1[%c0, %c0_0, %c0_1] : memref<2x8x4xf32, #tpu.memory_space<vmem>>, vector<2x8x4xf32>
    %1 = vector.extract_strided_slice %0 {offsets = [0, 0, 0], sizes = [1, 8, 4], strides = [1, 1, 1]} : vector<2x8x4xf32> to vector<1x8x4xf32>
    %2 = vector.shape_cast %1 : vector<1x8x4xf32> to vector<8x4xf32>
    %3 = tpu.transpose %2, [1, 0] : vector<8x4xf32> -> vector<4x8xf32>
    %4 = vector.extract_strided_slice %0 {offsets = [1, 0, 0], sizes = [1, 8, 4], strides = [1, 1, 1]} : vector<2x8x4xf32> to vector<1x8x4xf32>
    %5 = vector.shape_cast %4 : vector<1x8x4xf32> to vector<8x4xf32>
    %6 = tpu.transpose %5, [1, 0] : vector<8x4xf32> -> vector<4x8xf32>
    %7 = tpu.concatenate %3, %6 in 0 : vector<4x8xf32>, vector<4x8xf32> -> vector<8x8xf32>
    %c0_2 = arith.constant 0 : index
    %c0_3 = arith.constant 0 : index
    %8 = vector.load %arg2[%c0_2, %c0_3] : memref<8x16xf32, #tpu.memory_space<vmem>>, vector<8x16xf32>
    %cst = arith.constant dense<0.000000e+00> : vector<8x16xf32>
    %9 = tpu.matmul %7, %8, %cst {dimension_numbers = #tpu.dot_dimension_numbers<[1], [0], [0], [1], [0, 0, 1, 1], [], []>} : vector<8x8xf32>, vector<8x16xf32>, vector<8x16xf32> -> vector<8x16xf32>
    %c0_4 = arith.constant 0 : index
    %c0_5 = arith.constant 0 : index
    %10 = vector.load %arg3[%c0_4, %c0_5] : memref<1x16xf32, #tpu.memory_space<vmem>>, vector<1x16xf32>
    %11 = vector.broadcast %10 : vector<1x16xf32> to vector<8x16xf32>
    %12 = arith.addf %9, %11 : vector<8x16xf32>
    %cst_6 = arith.constant 0.000000e+00 : f32
    %13 = vector.broadcast %cst_6 : f32 to vector<8x16xf32>
    %14 = arith.maximumf %12, %13 : vector<8x16xf32>
    %15 = vector.extract_strided_slice %14 {offsets = [0, 0], sizes = [1, 16], strides = [1, 1]} : vector<8x16xf32> to vector<1x16xf32>
    %16 = vector.extract_strided_slice %14 {offsets = [1, 0], sizes = [1, 16], strides = [1, 1]} : vector<8x16xf32> to vector<1x16xf32>
    %17 = arith.maximumf %15, %16 : vector<1x16xf32>
    %18 = vector.extract_strided_slice %14 {offsets = [2, 0], sizes = [1, 16], strides = [1, 1]} : vector<8x16xf32> to vector<1x16xf32>
    %19 = vector.extract_strided_slice %14 {offsets = [3, 0], sizes = [1, 16], strides = [1, 1]} : vector<8x16xf32> to vector<1x16xf32>
    %20 = arith.maximumf %18, %19 : vector<1x16xf32>
    %21 = vector.extract_strided_slice %14 {offsets = [4, 0], sizes = [1, 16], strides = [1, 1]} : vector<8x16xf32> to vector<1x16xf32>
    %22 = vector.extract_strided_slice %14 {offsets = [5, 0], sizes = [1, 16], strides = [1, 1]} : vector<8x16xf32> to vector<1x16xf32>
    %23 = arith.maximumf %21, %22 : vector<1x16xf32>
    %24 = vector.extract_strided_slice %14 {offsets = [6, 0], sizes = [1, 16], strides = [1, 1]} : vector<8x16xf32> to vector<1x16xf32>
    %25 = vector.extract_strided_slice %14 {offsets = [7, 0], sizes = [1, 16], strides = [1, 1]} : vector<8x16xf32> to vector<1x16xf32>
    %26 = arith.maximumf %24, %25 : vector<1x16xf32>
    %27 = tpu.concatenate %17, %20, %23, %26 in 0 : vector<1x16xf32>, vector<1x16xf32>, vector<1x16xf32>, vector<1x16xf32> -> vector<4x16xf32>
    %c0_7 = arith.constant 0 : index
    %c0_8 = arith.constant 0 : index
    %28 = vector.load %arg4[%c0_7, %c0_8] : memref<16x16xf32, #tpu.memory_space<vmem>>, vector<16x16xf32>
    %cst_9 = arith.constant dense<0.000000e+00> : vector<4x16xf32>
    %29 = tpu.matmul %27, %28, %cst_9 {dimension_numbers = #tpu.dot_dimension_numbers<[1], [0], [0], [1], [0, 0, 1, 1], [], []>} : vector<4x16xf32>, vector<16x16xf32>, vector<4x16xf32> -> vector<4x16xf32>
    %c0_10 = arith.constant 0 : index
    %c0_11 = arith.constant 0 : index
    %30 = vector.load %arg5[%c0_10, %c0_11] : memref<1x16xf32, #tpu.memory_space<vmem>>, vector<1x16xf32>
    %31 = vector.broadcast %30 : vector<1x16xf32> to vector<4x16xf32>
    %32 = arith.addf %29, %31 : vector<4x16xf32>
    %cst_12 = arith.constant 0.000000e+00 : f32
    %33 = vector.broadcast %cst_12 : f32 to vector<4x16xf32>
    %34 = arith.maximumf %32, %33 : vector<4x16xf32>
    %35 = vector.extract_strided_slice %34 {offsets = [0, 0], sizes = [1, 16], strides = [1, 1]} : vector<4x16xf32> to vector<1x16xf32>
    %36 = vector.extract_strided_slice %34 {offsets = [1, 0], sizes = [1, 16], strides = [1, 1]} : vector<4x16xf32> to vector<1x16xf32>
    %37 = arith.maximumf %35, %36 : vector<1x16xf32>
    %38 = vector.extract_strided_slice %34 {offsets = [2, 0], sizes = [1, 16], strides = [1, 1]} : vector<4x16xf32> to vector<1x16xf32>
    %39 = vector.extract_strided_slice %34 {offsets = [3, 0], sizes = [1, 16], strides = [1, 1]} : vector<4x16xf32> to vector<1x16xf32>
    %40 = arith.maximumf %38, %39 : vector<1x16xf32>
    %41 = tpu.concatenate %37, %40 in 0 : vector<1x16xf32>, vector<1x16xf32> -> vector<2x16xf32>
    %c0_13 = arith.constant 0 : index
    %c0_14 = arith.constant 0 : index
    %42 = vector.load %arg6[%c0_13, %c0_14] : memref<16x40xf32, #tpu.memory_space<vmem>>, vector<16x40xf32>
    %cst_15 = arith.constant dense<0.000000e+00> : vector<2x40xf32>
    %43 = tpu.matmul %41, %42, %cst_15 {dimension_numbers = #tpu.dot_dimension_numbers<[1], [0], [0], [1], [0, 0, 1, 1], [], []>} : vector<2x16xf32>, vector<16x40xf32>, vector<2x40xf32> -> vector<2x40xf32>
    %c0_16 = arith.constant 0 : index
    %c0_17 = arith.constant 0 : index
    %44 = vector.load %arg7[%c0_16, %c0_17] : memref<1x40xf32, #tpu.memory_space<vmem>>, vector<1x40xf32>
    %45 = vector.broadcast %44 : vector<1x40xf32> to vector<2x40xf32>
    %46 = arith.addf %43, %45 : vector<2x40xf32>
    %cst_18 = arith.constant 0.000000e+00 : f32
    %47 = vector.broadcast %cst_18 : f32 to vector<2x40xf32>
    %48 = arith.maximumf %46, %47 : vector<2x40xf32>
    %c0_19 = arith.constant 0 : index
    %c0_20 = arith.constant 0 : index
    %49 = vector.load %arg8[%c0_19, %c0_20] : memref<40x4xf32, #tpu.memory_space<vmem>>, vector<40x4xf32>
    %cst_21 = arith.constant dense<0.000000e+00> : vector<2x4xf32>
    %50 = tpu.matmul %48, %49, %cst_21 {dimension_numbers = #tpu.dot_dimension_numbers<[1], [0], [0], [1], [0, 0, 1, 1], [], []>} : vector<2x40xf32>, vector<40x4xf32>, vector<2x4xf32> -> vector<2x4xf32>
    %c0_22 = arith.constant 0 : index
    %c0_23 = arith.constant 0 : index
    %51 = vector.load %arg9[%c0_22, %c0_23] : memref<1x4xf32, #tpu.memory_space<vmem>>, vector<1x4xf32>
    %52 = vector.broadcast %51 : vector<1x4xf32> to vector<2x4xf32>
    %53 = arith.addf %50, %52 : vector<2x4xf32>
    %c0_24 = arith.constant 0 : index
    %c0_25 = arith.constant 0 : index
    %54 = vector.load %arg10[%c0_24, %c0_25] : memref<2x4xf32, #tpu.memory_space<vmem>>, vector<2x4xf32>
    tpu.vector_store %arg10[%c0_24, %c0_25], %53 {strides = array<i32>} : memref<2x4xf32, #tpu.memory_space<vmem>>, vector<2x4xf32>,
    return
  }
  func.func @transform_0(%arg0: i32) -> (i32, i32, i32) {
    %c0_i32 = arith.constant 0 : i32
    %c0_i32_0 = arith.constant 0 : i32
    %c0_i32_1 = arith.constant 0 : i32
    return %arg0, %c0_i32, %c0_i32_0 : i32, i32, i32
  }
  func.func @transform_1(%arg0: i32) -> (i32, i32) {
    %c0_i32 = arith.constant 0 : i32
    %c0_i32_0 = arith.constant 0 : i32
    %c0_i32_1 = arith.constant 0 : i32
    return %c0_i32, %c0_i32_0 : i32, i32
  }
  func.func @transform_2(%arg0: i32) -> (i32, i32) {
    %c0_i32 = arith.constant 0 : i32
    %c0_i32_0 = arith.constant 0 : i32
    %c0_i32_1 = arith.constant 0 : i32
    return %c0_i32, %c0_i32_0 : i32, i32
  }
  func.func @transform_3(%arg0: i32) -> (i32, i32) {
    %c0_i32 = arith.constant 0 : i32
    %c0_i32_0 = arith.constant 0 : i32
    %c0_i32_1 = arith.constant 0 : i32
    return %c0_i32, %c0_i32_0 : i32, i32
  }
  func.func @transform_4(%arg0: i32) -> (i32, i32) {
    %c0_i32 = arith.constant 0 : i32
    %c0_i32_0 = arith.constant 0 : i32
    %c0_i32_1 = arith.constant 0 : i32
    return %c0_i32, %c0_i32_0 : i32, i32
  }
  func.func @transform_5(%arg0: i32) -> (i32, i32) {
    %c0_i32 = arith.constant 0 : i32
    %c0_i32_0 = arith.constant 0 : i32
    %c0_i32_1 = arith.constant 0 : i32
    return %c0_i32, %c0_i32_0 : i32, i32
  }
  func.func @transform_6(%arg0: i32) -> (i32, i32) {
    %c0_i32 = arith.constant 0 : i32
    %c0_i32_0 = arith.constant 0 : i32
    %c0_i32_1 = arith.constant 0 : i32
    return %c0_i32, %c0_i32_0 : i32, i32
  }
  func.func @transform_7(%arg0: i32) -> (i32, i32) {
    %c0_i32 = arith.constant 0 : i32
    %c0_i32_0 = arith.constant 0 : i32
    %c0_i32_1 = arith.constant 0 : i32
    return %c0_i32, %c0_i32_0 : i32, i32
  }
  func.func @transform_8(%arg0: i32) -> (i32, i32) {
    %c0_i32 = arith.constant 0 : i32
    %c0_i32_0 = arith.constant 0 : i32
    %c0_i32_1 = arith.constant 0 : i32
    return %c0_i32, %c0_i32_0 : i32, i32
  }
  func.func @transform_9(%arg0: i32) -> (i32, i32) {
    %c0_i32 = arith.constant 0 : i32
    %c0_i32_0 = arith.constant 0 : i32
    return %arg0, %c0_i32 : i32, i32
  }
}

</mosaic_0001>

<bundles_post_ra>
// kernel: deepant_forward_pallas.1
= control target key start
LH: loop header
LB: loop body
LE: loop exit
PB: predicated region body
PF: predicated region fallthrough
CT: control target
= control target key end

     0   :  { %s686_s0 = inlined_call_operand.vmem [shape: f32[2,8,4], index: 0, kind: input, shape index: {}]   ;;  %s687_s1 = inlined_call_operand.vmem [shape: f32[8,16], index: 1, kind: input, shape index: {}]   ;;  %s688_s2 = inlined_call_operand.vmem [shape: f32[1,16], index: 2, kind: input, shape index: {}]   ;;  %s689_s3 = inlined_call_operand.vmem [shape: f32[16,16], index: 3, kind: input, shape index: {}]   ;;  %s690_s4 = inlined_call_operand.vmem [shape: f32[1,16], index: 4, kind: input, shape index: {}]   ;;  %s691_s5 = inlined_call_operand.vmem [shape: f32[16,40], index: 5, kind: input, shape index: {}]   ;;  %s692_s6 = inlined_call_operand.vmem [shape: f32[1,40], index: 6, kind: input, shape index: {}]   ;;  %s693_s7 = inlined_call_operand.vmem [shape: f32[40,4], index: 7, kind: input, shape index: {}]   ;;  %s694_s8 = inlined_call_operand.vmem [shape: f32[1,4], index: 8, kind: input, shape index: {}]   ;;  %s695_s9 = inlined_call_operand.hbm [shape: f32[2,4], index: 9, kind: output, shape index: {}]  }
   0x1   :  { %v34_v0 = vld [vmem:[%s686_s0 + $0x8] sm:$0xff] }
   0x2   :  { %14 = vsyncpa [#allocation3], 0  ;;  %67 = vxpose.xlu0.b32.start.end [1/1] (short) (narrow) %v34_v0, 8  ;;  %v560_v1 = vmov 0.0   ;;  %v104_v2 = vld [vmem:[%s687_s1] sm:$0xff]  ;;  %vm561_vm0 = vmmov 0  }
   0x3   :  { %503 = vmatprep.subr.mxu0 %v560_v1  ;;  %v33_v3 = vld [vmem:[%s686_s0] sm:$0xff]  ;;  %505 = vmatprep.mubr.msk.f32.mxu0 %vm561_vm0, %v560_v1  ;;  %vm102_vm1 = vcmask 1043456   ;;  %vm112_vm2 = vcmask 64512   ;;  %v205_v8 = vld [vmem:[%s689_s3 + $0x8] sm:$0xff]  ;;  %vm198_vm3 = vcmask 1040384   ;;  %vm200_vm4 = vcmask 1041408  }
   0x4   :  { %504 = vmatpush3.msra.mxu0 %v104_v2  ;;  %522 = vmatprep.subr.mxu1 %v560_v1  ;;  %v204_v9 = vld [vmem:[%s689_s3] sm:$0xff]  ;;  %vm202_vm5 = vcmask 1042432   ;;  %vm213_vm6 = vcmask 130048   ;;  %v297_v23 = vld [vmem:[%s691_s5 + $0x8] sm:$0xff]  ;;  %v382_v26 = vld [vmem:[%s693_s7 + $0x18] sm:$0xff]  ;;  %vm391_vm7 = vcmask 326656  }
   0x5   :  { %508 = vmatprep.subr.mxu0 %v560_v1  ;;  %532 = vmatprep.mubr.msk.f32.mxu1 %vm561_vm0, %v560_v1  ;;  %v481_v10 = vld [vmem:[%s688_s2] ss:$0 sm:$0xff]  ;;  %v381_v36 = vld [vmem:[%s693_s7 + $0x10] sm:$0xff]  ;;  %v380_v37 = vld [vmem:[%s693_s7 + $0x8] sm:$0xff]  ;;  %s562_s14 = smov [#allocation2]   ;;  %vm465_vm8 = vcmask 25600  }
   0x6   :  { %35 = vxpose.xlu0.b32.start.end [1/1] (short) (narrow) %v33_v3, 8  ;;  %v296_v24 = vld [vmem:[%s691_s5] sm:$0xff]  ;;  %s473_s0 = sshll.u32 %s562_s14, 4  ;;  %s474_s0 = int_to_ptr.vmem [resolvable:$true] %s473_s0 }
   0x7   :  { %v383_v25 = vld [vmem:[%s693_s7 + $0x20] sm:$0xff]  ;;  %p543_p1 = scmp.lt.s32.totalorder %s474_s0, %s474_s0 }
   0x8   :  { %523 = vmatpush3.msra.mxu1 %v383_v25  ;;  %v483_v27 = vld [vmem:[%s690_s4] ss:$0 sm:$0xff] }
   0x9   :  { %524 = vmatprep.subr.mxu1 %v560_v1  ;;  %v379_v38 = vld [vmem:[%s693_s7] sm:$0xff]  ;;  %s538_s7 = scalar_lea.vmem %s474_s0, 32 }
   0xa   :  { %525 = vmatpush3.msra.mxu1 %v382_v26  ;;  %v485_v39 = vld [vmem:[%s692_s6] ss:$0 sm:$0xff]  ;;  %p539_p0 = scmp.ne.s32.totalorder %s474_s0, %s538_s7  ;;  %p544_p2 = scmp.lt.s32.totalorder %s538_s7, %s538_s7 }
   0xb   :  { %526 = vmatprep.subr.mxu1 %v560_v1  ;;  %v487_v44 = vld [vmem:[%s694_s8] ss:$0 sm:$0xff] }
   0xc   :  { %527 = vmatpush3.msra.mxu1 %v381_v36  ;;  %p545_p3 = por %p544_p2, %p543_p1 }
   0xd   :  { %528 = vmatprep.subr.mxu1 %v560_v1 }
   0xe   :  { %529 = vmatpush3.msra.mxu1 %v380_v37  ;;  %p546_p4 = pnand %p545_p3, %p539_p0 }
   0xf   :  { %530 = vmatprep.subr.mxu1 %v560_v1 }
  0x10   :  { %531 = vmatpush3.msra.mxu1 %v379_v38 }
  0x7e   :  { %v83_v4 = vpop.trf.xlu0 }
  0x7f   :  { %v100_v5 = vrot.slane %v83_v4, 4 }
  0x82   :  { %v51_v6 = vpop.trf.xlu0 }
  0x83   :  { %v103_v7 = vsel %vm102_vm1, %v51_v6, %v100_v5 }
  0x84   :  { %506 = vmatmul.mubr.msk.f32.vlgmr.msra.gmra.mxu0 %vm112_vm2, %v103_v7 }
  0x85   :  { %512 = vmatprep.mubr.msk.f32.mxu0 %vm561_vm0, %v560_v1  ;;  %509 = vmatpush3.msra.mxu0 %v205_v8 }
  0x86   :  { %510 = vmatprep.subr.mxu0 %v560_v1 }
  0x87   :  { %511 = vmatpush3.msra.mxu0 %v204_v9 }
  0x88   :  { %515 = vmatprep.subr.mxu0 %v560_v1 }
 0x144   :  { %v182_v11 = vpop.f32.mrf.mxu0 }
 0x145   :  { %v183_v12 = vadd.f32 %v481_v10, %v182_v11 }
 0x146   :  { %v507_v13 = vpop.f32.mrf.mxu0 }
 0x147   :  { %v186_v14 = vmax.f32 %v183_v12, 0.0 }
 0x149   :  { %v188_v15 = vrot.slane %v186_v14, 1 }
 0x14b   :  { %v190_v16 = vmax.f32 %v186_v14, %v188_v15 }
 0x14d   :  { %v192_v17 = vrot.slane %v190_v16, 1  ;;  %v194_v18 = vrot.slane %v190_v16, 2  ;;  %v196_v19 = vrot.slane %v190_v16, 3 }
 0x14f   :  { %v199_v20 = vsel %vm198_vm3, %v190_v16, %v192_v17 }
 0x150   :  { %v201_v21 = vsel %vm200_vm4, %v199_v20, %v194_v18 }
 0x151   :  { %v203_v22 = vsel %vm202_vm5, %v201_v21, %v196_v19 }
 0x152   :  { %513 = vmatmul.mubr.msk.f32.vlgmr.msra.gmra.mxu0 %vm213_vm6, %v203_v22 }
 0x153   :  { %519 = vmatprep.mubr.msk.f32.mxu0 %vm561_vm0, %v560_v1  ;;  %516 = vmatpush3.msra.mxu0 %v297_v23 }
 0x154   :  { %517 = vmatprep.subr.mxu0 %v560_v1 }
 0x155   :  { %518 = vmatpush3.msra.mxu0 %v296_v24 }
 0x212   :  { %v283_v28 = vpop.f32.mrf.mxu0 }
 0x213   :  { %v284_v29 = vadd.f32 %v483_v27, %v283_v28 }
 0x214   :  { %v514_v30 = vpop.f32.mrf.mxu0 }
 0x215   :  { %v287_v31 = vmax.f32 %v284_v29, 0.0 }
 0x217   :  { %v289_v32 = vrot.slane %v287_v31, 1 }
 0x219   :  { %v291_v33 = vmax.f32 %v287_v31, %v289_v32 }
 0x21b   :  { %v293_v34 = vrot.slane %v291_v33, 1 }
 0x21d   :  { %v295_v35 = vsel %vm198_vm3, %v291_v33, %v293_v34 }
 0x21e   :  { %520 = vmatmul.mubr.msk.f32.vlgmr.msra.gmra.mxu0 %vm213_vm6, %v295_v35 }
 0x2de   :  { %v374_v40 = vpop.f32.mrf.mxu0 }
 0x2df   :  { %v375_v41 = vadd.f32 %v485_v39, %v374_v40 }
 0x2e0   :  { %v521_v42 = vpop.f32.mrf.mxu0 }
 0x2e1   :  { %v378_v43 = vmax.f32 %v375_v41, 0.0 }
 0x2e3   :  { %533 = vmatmul.mubr.msk.f32.vlgmr.msra.gmra.mxu1 %vm391_vm7, %v378_v43 }
 0x3a3   :  { %v461_v45 = vpop.f32.mrf.mxu1 }
 0x3a4   :  { %v462_v46 = vadd.f32 %v487_v44, %v461_v45 }
 0x3a5   :  { %v534_v47 = vpop.f32.mrf.mxu1 }
 0x3a6   :  { %466 = vst.msk [vmem:[#allocation2] sm:$0x3] %vm465_vm8, %v462_v46 }
 0x3a7   :  { %549 = shalt.err (!%p546_p4)
}
 0x3a8   :  { %476 = dma.vmem_to_hbm [thread:$0]  %s474_s0, 32, %s695_s9, [#allocation3]  }
 0x3a9   :  { %558 = dma.done.wait [#allocation3], 32  }
 0x3aa   :  { %559 = vsyncadd [#allocation3], 4294967264 }
 0x3ab   :  { %480 = vsyncpa [#allocation3], 1 }

</bundles_post_ra>
